<compile_context>
chip_gen: v5e
topology: v5e:2x2
jax: 0.10.0
libtpu: 0.0.40
codegen_flags: <defaults>
</compile_context>

<pallas_src>
import jax
import jax.numpy as jnp
from jax.experimental import pallas as pl
from jax.experimental.pallas import tpu as pltpu


# ----------------------------- Pallas kernel -------------------------------
def _make_kernel(lane_dense: bool):
    """Fused BinaryMask gate + 3-layer MLP (Linear/ReLU/Linear/ReLU/Linear)."""

    def kernel(x_ref, m_ref, w1_ref, b1_ref, w2_ref, b2_ref, w3_ref, b3_ref,
               pred_ref, xm_ref):
        cd = w1_ref.dtype  # compute dtype (f32 or bf16); accumulation is always f32.
        x = x_ref[...]

        # MXU chain. The batch-shared mask is folded into W1 by the wrapper, so this
        # path consumes x directly and has no dependency on the x_masked side path.
        h = jnp.dot(x, w1_ref[...], preferred_element_type=jnp.float32) + b1_ref[...]
        h = jnp.maximum(h, 0.0).astype(cd)
        h = jnp.dot(h, w2_ref[...], preferred_element_type=jnp.float32) + b2_ref[...]
        h = jnp.maximum(h, 0.0).astype(cd)
        # TODO(synk): pred (bt, O=4) stores are still lane-sparse (4/128); emit bf16 or
        # a transposed (O, bt) layout if this ever binds after the xm store fix.
        pred_ref[...] = (jnp.dot(h, w3_ref[...], preferred_element_type=jnp.float32)
                         + b3_ref[...]).astype(pred_ref.dtype)

        # x_masked side output.
        if lane_dense:
            # Pack 8 consecutive batch rows into one (8*D)-wide row.  Row-major
            # identical to [bt, D] (wrapper reshape is a free metadata op), so the
            # VMEM->HBM store is a full-lane vst instead of bt/8 masked 16/128 stores.
            rows = xm_ref.shape[0]                        # bt // 8
            parts = [x_ref[pl.ds(j, rows, stride=8), :] for j in range(8)]
            x_wide = jnp.concatenate(parts, axis=-1)      # (bt//8, 8*D)
            xm_ref[...] = (x_wide * m_ref[...]).astype(xm_ref.dtype)
        else:
            xm_ref[...] = (x * m_ref[...]).astype(xm_ref.dtype)

    return kernel


# ----------------------------- tile selection -------------------------------
def _pick_batch_tile(B, requested, target=8192):
    """Pick a batch tile: large (target ~8K rows) to amortize per-step overhead,
    >= 2 grid steps once B >= 128 (v7x megacore), multiple of 64 when possible so
    the lane-dense xm block stays (8,128)-aligned."""
    if requested is not None:
        bt = min(requested, B)
        if B % bt != 0:
            raise ValueError("batch must be divisible by batch_tile")
        return bt
    if B < 128:
        return B                       # tiny batch: single grid step
    cap = min(target, B // 2)          # guarantee >= 2 grid steps
    divisors = [d for d in range(1, cap + 1) if B % d == 0]
    mult64 = [d for d in divisors if d % 64 == 0]
    pool = mult64 if mult64 else divisors
    return max(pool)


# ------------------------------- forward ------------------------------------
def selector_mlp_forward(x, m_row, params, *, batch_tile=None,
                         compute_dtype=jnp.float32, out_dtype=None):
    """SelectorMLP forward.

    x:      [B, D] input.
    m_row:  [1, D] BinaryMask row (deterministic expected relaxed mask, batch-shared).
    params: ((W1, b1), (W2, b2), (W3, b3)) with W as [in, out], b as [1, out] f32.
    Returns (pred [B, O], x_masked [B, D], m [1, D]).

    compute_dtype=jnp.bfloat16 halves the streamed x/xm HBM traffic (f32 MXU
    accumulation is kept); note the tight f32 reference tolerances then no longer hold.
    """
    (w1, b1), (w2, b2), (w3, b3) = params
    B, D = x.shape
    H1, H2, O = w1.shape[1], w2.shape[1], w3.shape[1]
    out_dtype = x.dtype if out_dtype is None else out_dtype
    out_bytes = jnp.dtype(out_dtype).itemsize
    c_bytes = jnp.dtype(compute_dtype).itemsize

    bt = _pick_batch_tile(B, batch_tile)
    grid_len = B // bt

    # Lane-dense xm path needs the 8-row packing to tile cleanly.
    lane_dense = (B % 8 == 0) and (bt == B or bt % 64 == 0) and ((8 * D) % 128 == 0)

    # Fold the batch-shared mask into W1: x @ (m^T * W1) == (x*m) @ W1.
    w1m = w1 * m_row.reshape(D, 1)

    xc = x.astype(compute_dtype)
    w1c = w1m.astype(compute_dtype)
    w2c = w2.astype(compute_dtype)
    w3c = w3.astype(compute_dtype)

    if lane_dense:
        m_in = jnp.tile(m_row, (1, 8)).astype(compute_dtype)      # (1, 8*D) = (1, 128)
        xm_shape = (B // 8, 8 * D)
        xm_spec = pl.BlockSpec((bt // 8, 8 * D), lambda i: (i, 0))
        m_spec = pl.BlockSpec((1, 8 * D), lambda i: (0, 0))
    else:
        m_in = m_row.astype(compute_dtype)
        xm_shape = (B, D)
        xm_spec = pl.BlockSpec((bt, D), lambda i: (i, 0))
        m_spec = pl.BlockSpec((1, D), lambda i: (0, 0))

    # Weights/biases/mask row are tiny -> whole arrays resident (same block each step).
    full = lambda shape: pl.BlockSpec(shape, lambda i: (0, 0))

    cost = pl.CostEstimate(
        flops=2 * B * (D * H1 + H1 * H2 + H2 * O) + B * D,
        transcendentals=0,
        bytes_accessed=(B * D * c_bytes                       # read x
                        + B * D * out_bytes                   # write x_masked
                        + B * O * out_bytes                   # write pred
                        + (D * H1 + H1 * H2 + H2 * O + H1 + H2 + O) * 4),
    )

    pred, xm_out = pl.pallas_call(
        _make_kernel(lane_dense),
        out_shape=(
            jax.ShapeDtypeStruct((B, O), out_dtype),
            jax.ShapeDtypeStruct(xm_shape, out_dtype),
        ),
        grid_spec=pltpu.PrefetchScalarGridSpec(
            num_scalar_prefetch=0,
            grid=(grid_len,),
            in_specs=[
                pl.BlockSpec((bt, D), lambda i: (i, 0)),   # x (batch-tiled)
                m_spec,                                    # mask row (resident)
                full((D, H1)), full((1, H1)),              # W1 (mask-folded), b1
                full((H1, H2)), full((1, H2)),             # W2, b2
                full((H2, O)), full((1, O)),               # W3, b3
            ],
            out_specs=[
                pl.BlockSpec((bt, O), lambda i: (i, 0)),   # pred
                xm_spec,                                   # x_masked (lane-dense slab)
            ],
        ),
        compiler_params=pltpu.CompilerParams(
            # Megacore sharding only pays with >= 2 grid steps.
            dimension_semantics=("parallel",) if grid_len > 1 else ("arbitrary",),
            # Above v5e (16 MiB) / v6e (32 MiB) scoped defaults; <= v7x 64 MiB physical.
            vmem_limit_bytes=64 * 1024 * 1024,
        ),
        cost_estimate=cost,
    )(xc, m_in, w1c, b1, w2c, b2, w3c, b3)

    # Free row-major metadata reshape back to [B, D].
    x_masked = xm_out.reshape(B, D)

    # Return the batch-shared mask row; do NOT materialize a [B, D] broadcast
    # (that would add B*D*4 bytes of pure HBM write traffic outside the kernel).
    return pred, x_masked, m_row


# --------------------------- parameter construction -------------------------
def init_linear(key, fan_in, fan_out):
    """Deterministic init mirroring torch.nn.Linear default (uniform +/- 1/sqrt(fan_in))."""
    kw, kb = jax.random.split(key)
    bound = 1.0 / jnp.sqrt(fan_in)
    w = jax.random.uniform(kw, (fan_in, fan_out), jnp.float32, -bound, bound)
    b = jax.random.uniform(kb, (1, fan_out), jnp.float32, -bound, bound)
    return w, b


def binary_mask_row(logits, temperature):
    """Deterministic (expected) relaxed BinaryMask: [K, D] logits -> [1, D] mask row."""
    probs = jax.nn.softmax(logits / temperature, axis=1)      # [K, D]
    m_row = jnp.clip(jnp.sum(probs, axis=0), 0.0, 1.0)        # [D]
    return m_row[None, :]                                     # [1, D]


def _reference(x, m_row, params):
    (w1, b1), (w2, b2), (w3, b3) = params
    xm = x * m_row
    h = jnp.maximum(xm @ w1 + b1, 0.0)
    h = jnp.maximum(h @ w2 + b2, 0.0)
    return h @ w3 + b3, xm


# ---------------------------------- main ------------------------------------
if __name__ == "__main__":
    # SelectorMLP('binary_mask', input_size=16, output_size=4, hidden=[32, 32],
    #             num_selections=4), no preselected features.
    D, H1, H2, O, K = 16, 32, 32, 4, 4
    temperature = 0.5

    key = jax.random.PRNGKey(0)
    kx, kx2, klog, k1, k2, k3 = jax.random.split(key, 6)

    logits = jax.random.normal(klog, (K, D), jnp.float32)     # BinaryMask._logits
    m_row = binary_mask_row(logits, temperature)
    params = (
        init_linear(k1, D, H1),
        init_linear(k2, H1, H2),
        init_linear(k3, H2, O),
    )

    # --- case 1: tiny batch (single grid step, lane-dense xm output) ---------
    B = 16
    x = jax.random.normal(kx, (B, D), jnp.float32)
    pred, x_masked, m_out = selector_mlp_forward(x, m_row, params)
    jax.block_until_ready((pred, x_masked, m_out))

    pred_ref, xm_ref = _reference(x, m_row, params)
    assert pred.shape == (B, O) and x_masked.shape == (B, D) and m_out.shape == (1, D)
    assert jnp.allclose(pred, pred_ref, atol=1e-5, rtol=1e-5)
    assert jnp.allclose(x_masked, xm_ref, atol=1e-6, rtol=1e-6)

    # --- case 2: larger batch (multi-step "parallel" grid, batch tiling) -----
    B2 = 256
    x2 = jax.random.normal(kx2, (B2, D), jnp.float32)
    pred2, x_masked2, _ = selector_mlp_forward(x2, m_row, params)
    jax.block_until_ready((pred2, x_masked2))

    pred2_ref, xm2_ref = _reference(x2, m_row, params)
    assert jnp.allclose(pred2, pred2_ref, atol=1e-5, rtol=1e-5)
    assert jnp.allclose(x_masked2, xm2_ref, atol=1e-6, rtol=1e-6)

    print("KERNEL_OK")
</pallas_src>

<mosaic_0001>
module attributes {stable_mosaic.version = 11 : i64} {
  func.func @kernel(%arg0: i32, %arg1: memref<16x16xf32, #tpu.memory_space<vmem>>, %arg2: memref<1x128xf32, #tpu.memory_space<vmem>>, %arg3: memref<16x32xf32, #tpu.memory_space<vmem>>, %arg4: memref<1x32xf32, #tpu.memory_space<vmem>>, %arg5: memref<32x32xf32, #tpu.memory_space<vmem>>, %arg6: memref<1x32xf32, #tpu.memory_space<vmem>>, %arg7: memref<32x4xf32, #tpu.memory_space<vmem>>, %arg8: memref<1x4xf32, #tpu.memory_space<vmem>>, %arg9: memref<16x4xf32, #tpu.memory_space<vmem>>, %arg10: memref<2x128xf32, #tpu.memory_space<vmem>>) attributes {dimension_semantics = [#tpu.dimension_semantics<arbitrary>], iteration_bounds = array<i64: 1>, scalar_prefetch = 0 : i64, scratch_operands = 0 : i64, tpu.core_type = #tpu.core_type<tc>, window_params = [{transform_indices = @transform_0, window_bounds = array<i64: 16, 16>}, {pipeline_mode = #tpu.pipeline_mode<synchronous>, transform_indices = @transform_1, window_bounds = array<i64: 1, 128>}, {pipeline_mode = #tpu.pipeline_mode<synchronous>, transform_indices = @transform_2, window_bounds = array<i64: 16, 32>}, {pipeline_mode = #tpu.pipeline_mode<synchronous>, transform_indices = @transform_3, window_bounds = array<i64: 1, 32>}, {pipeline_mode = #tpu.pipeline_mode<synchronous>, transform_indices = @transform_4, window_bounds = array<i64: 32, 32>}, {pipeline_mode = #tpu.pipeline_mode<synchronous>, transform_indices = @transform_5, window_bounds = array<i64: 1, 32>}, {pipeline_mode = #tpu.pipeline_mode<synchronous>, transform_indices = @transform_6, window_bounds = array<i64: 32, 4>}, {pipeline_mode = #tpu.pipeline_mode<synchronous>, transform_indices = @transform_7, window_bounds = array<i64: 1, 4>}, {transform_indices = @transform_8, window_bounds = array<i64: 16, 4>}, {transform_indices = @transform_9, window_bounds = array<i64: 2, 128>}]} {
    %c0 = arith.constant 0 : index
    %c0_0 = arith.constant 0 : index
    %0 = vector.load %arg1[%c0, %c0_0] : memref<16x16xf32, #tpu.memory_space<vmem>>, vector<16x16xf32>
    %c0_1 = arith.constant 0 : index
    %c0_2 = arith.constant 0 : index
    %1 = vector.load %arg3[%c0_1, %c0_2] : memref<16x32xf32, #tpu.memory_space<vmem>>, vector<16x32xf32>
    %cst = arith.constant dense<0.000000e+00> : vector<16x32xf32>
    %2 = tpu.matmul %0, %1, %cst {dimension_numbers = #tpu.dot_dimension_numbers<[1], [0], [0], [1], [0, 0, 1, 1], [], []>} : vector<16x16xf32>, vector<16x32xf32>, vector<16x32xf32> -> vector<16x32xf32>
    %c0_3 = arith.constant 0 : index
    %c0_4 = arith.constant 0 : index
    %3 = vector.load %arg4[%c0_3, %c0_4] : memref<1x32xf32, #tpu.memory_space<vmem>>, vector<1x32xf32>
    %4 = vector.broadcast %3 : vector<1x32xf32> to vector<16x32xf32>
    %5 = arith.addf %2, %4 : vector<16x32xf32>
    %cst_5 = arith.constant 0.000000e+00 : f32
    %6 = vector.broadcast %cst_5 : f32 to vector<16x32xf32>
    %7 = arith.maximumf %5, %6 : vector<16x32xf32>
    %c0_6 = arith.constant 0 : index
    %c0_7 = arith.constant 0 : index
    %8 = vector.load %arg5[%c0_6, %c0_7] : memref<32x32xf32, #tpu.memory_space<vmem>>, vector<32x32xf32>
    %cst_8 = arith.constant dense<0.000000e+00> : vector<16x32xf32>
    %9 = tpu.matmul %7, %8, %cst_8 {dimension_numbers = #tpu.dot_dimension_numbers<[1], [0], [0], [1], [0, 0, 1, 1], [], []>} : vector<16x32xf32>, vector<32x32xf32>, vector<16x32xf32> -> vector<16x32xf32>
    %c0_9 = arith.constant 0 : index
    %c0_10 = arith.constant 0 : index
    %10 = vector.load %arg6[%c0_9, %c0_10] : memref<1x32xf32, #tpu.memory_space<vmem>>, vector<1x32xf32>
    %11 = vector.broadcast %10 : vector<1x32xf32> to vector<16x32xf32>
    %12 = arith.addf %9, %11 : vector<16x32xf32>
    %cst_11 = arith.constant 0.000000e+00 : f32
    %13 = vector.broadcast %cst_11 : f32 to vector<16x32xf32>
    %14 = arith.maximumf %12, %13 : vector<16x32xf32>
    %c0_12 = arith.constant 0 : index
    %c0_13 = arith.constant 0 : index
    %15 = vector.load %arg7[%c0_12, %c0_13] : memref<32x4xf32, #tpu.memory_space<vmem>>, vector<32x4xf32>
    %cst_14 = arith.constant dense<0.000000e+00> : vector<16x4xf32>
    %16 = tpu.matmul %14, %15, %cst_14 {dimension_numbers = #tpu.dot_dimension_numbers<[1], [0], [0], [1], [0, 0, 1, 1], [], []>} : vector<16x32xf32>, vector<32x4xf32>, vector<16x4xf32> -> vector<16x4xf32>
    %c0_15 = arith.constant 0 : index
    %c0_16 = arith.constant 0 : index
    %17 = vector.load %arg8[%c0_15, %c0_16] : memref<1x4xf32, #tpu.memory_space<vmem>>, vector<1x4xf32>
    %18 = vector.broadcast %17 : vector<1x4xf32> to vector<16x4xf32>
    %19 = arith.addf %16, %18 : vector<16x4xf32>
    %c0_17 = arith.constant 0 : index
    %c0_18 = arith.constant 0 : index
    %20 = vector.load %arg9[%c0_17, %c0_18] : memref<16x4xf32, #tpu.memory_space<vmem>>, vector<16x4xf32>
    tpu.vector_store %arg9[%c0_17, %c0_18], %19 {strides = array<i32>} : memref<16x4xf32, #tpu.memory_space<vmem>>, vector<16x4xf32>,
    %c0_19 = arith.constant 0 : index
    %c0_20 = arith.constant 0 : index
    %21 = tpu.strided_load %arg1[%c0_19, %c0_20] {strides = array<i32: 8, 1>} : memref<16x16xf32, #tpu.memory_space<vmem>>, vector<2x16xf32>
    %c1 = arith.constant 1 : index
    %c0_21 = arith.constant 0 : index
    %22 = tpu.strided_load %arg1[%c1, %c0_21] {strides = array<i32: 8, 1>} : memref<16x16xf32, #tpu.memory_space<vmem>>, vector<2x16xf32>
    %c2 = arith.constant 2 : index
    %c0_22 = arith.constant 0 : index
    %23 = tpu.strided_load %arg1[%c2, %c0_22] {strides = array<i32: 8, 1>} : memref<16x16xf32, #tpu.memory_space<vmem>>, vector<2x16xf32>
    %c3 = arith.constant 3 : index
    %c0_23 = arith.constant 0 : index
    %24 = tpu.strided_load %arg1[%c3, %c0_23] {strides = array<i32: 8, 1>} : memref<16x16xf32, #tpu.memory_space<vmem>>, vector<2x16xf32>
    %c4 = arith.constant 4 : index
    %c0_24 = arith.constant 0 : index
    %25 = tpu.strided_load %arg1[%c4, %c0_24] {strides = array<i32: 8, 1>} : memref<16x16xf32, #tpu.memory_space<vmem>>, vector<2x16xf32>
    %c5 = arith.constant 5 : index
    %c0_25 = arith.constant 0 : index
    %26 = tpu.strided_load %arg1[%c5, %c0_25] {strides = array<i32: 8, 1>} : memref<16x16xf32, #tpu.memory_space<vmem>>, vector<2x16xf32>
    %c6 = arith.constant 6 : index
    %c0_26 = arith.constant 0 : index
    %27 = tpu.strided_load %arg1[%c6, %c0_26] {strides = array<i32: 8, 1>} : memref<16x16xf32, #tpu.memory_space<vmem>>, vector<2x16xf32>
    %c7 = arith.constant 7 : index
    %c0_27 = arith.constant 0 : index
    %28 = tpu.strided_load %arg1[%c7, %c0_27] {strides = array<i32: 8, 1>} : memref<16x16xf32, #tpu.memory_space<vmem>>, vector<2x16xf32>
    %29 = tpu.concatenate %21, %22, %23, %24, %25, %26, %27, %28 in 1 : vector<2x16xf32>, vector<2x16xf32>, vector<2x16xf32>, vector<2x16xf32>, vector<2x16xf32>, vector<2x16xf32>, vector<2x16xf32>, vector<2x16xf32> -> vector<2x128xf32>
    %c0_28 = arith.constant 0 : index
    %c0_29 = arith.constant 0 : index
    %30 = vector.load %arg2[%c0_28, %c0_29] : memref<1x128xf32, #tpu.memory_space<vmem>>, vector<1x128xf32>
    %31 = vector.broadcast %30 : vector<1x128xf32> to vector<2x128xf32>
    %32 = arith.mulf %29, %31 : vector<2x128xf32>
    %c0_30 = arith.constant 0 : index
    %c0_31 = arith.constant 0 : index
    %33 = vector.load %arg10[%c0_30, %c0_31] : memref<2x128xf32, #tpu.memory_space<vmem>>, vector<2x128xf32>
    tpu.vector_store %arg10[%c0_30, %c0_31], %32 {strides = array<i32>} : memref<2x128xf32, #tpu.memory_space<vmem>>, vector<2x128xf32>,
    return
  }
  func.func @transform_0(%arg0: i32) -> (i32, i32) {
    %c0_i32 = arith.constant 0 : i32
    %c0_i32_0 = arith.constant 0 : i32
    return %arg0, %c0_i32 : i32, i32
  }
  func.func @transform_1(%arg0: i32) -> (i32, i32) {
    %c0_i32 = arith.constant 0 : i32
    %c0_i32_0 = arith.constant 0 : i32
    %c0_i32_1 = arith.constant 0 : i32
    return %c0_i32, %c0_i32_0 : i32, i32
  }
  func.func @transform_2(%arg0: i32) -> (i32, i32) {
    %c0_i32 = arith.constant 0 : i32
    %c0_i32_0 = arith.constant 0 : i32
    %c0_i32_1 = arith.constant 0 : i32
    return %c0_i32, %c0_i32_0 : i32, i32
  }
  func.func @transform_3(%arg0: i32) -> (i32, i32) {
    %c0_i32 = arith.constant 0 : i32
    %c0_i32_0 = arith.constant 0 : i32
    %c0_i32_1 = arith.constant 0 : i32
    return %c0_i32, %c0_i32_0 : i32, i32
  }
  func.func @transform_4(%arg0: i32) -> (i32, i32) {
    %c0_i32 = arith.constant 0 : i32
    %c0_i32_0 = arith.constant 0 : i32
    %c0_i32_1 = arith.constant 0 : i32
    return %c0_i32, %c0_i32_0 : i32, i32
  }
  func.func @transform_5(%arg0: i32) -> (i32, i32) {
    %c0_i32 = arith.constant 0 : i32
    %c0_i32_0 = arith.constant 0 : i32
    %c0_i32_1 = arith.constant 0 : i32
    return %c0_i32, %c0_i32_0 : i32, i32
  }
  func.func @transform_6(%arg0: i32) -> (i32, i32) {
    %c0_i32 = arith.constant 0 : i32
    %c0_i32_0 = arith.constant 0 : i32
    %c0_i32_1 = arith.constant 0 : i32
    return %c0_i32, %c0_i32_0 : i32, i32
  }
  func.func @transform_7(%arg0: i32) -> (i32, i32) {
    %c0_i32 = arith.constant 0 : i32
    %c0_i32_0 = arith.constant 0 : i32
    %c0_i32_1 = arith.constant 0 : i32
    return %c0_i32, %c0_i32_0 : i32, i32
  }
  func.func @transform_8(%arg0: i32) -> (i32, i32) {
    %c0_i32 = arith.constant 0 : i32
    %c0_i32_0 = arith.constant 0 : i32
    return %arg0, %c0_i32 : i32, i32
  }
  func.func @transform_9(%arg0: i32) -> (i32, i32) {
    %c0_i32 = arith.constant 0 : i32
    %c0_i32_0 = arith.constant 0 : i32
    return %arg0, %c0_i32 : i32, i32
  }
}

</mosaic_0001>

<bundles_post_ra>
// kernel: tpu_custom_call.1
= control target key start
LH: loop header
LB: loop body
LE: loop exit
PB: predicated region body
PF: predicated region fallthrough
CT: control target
= control target key end

     0   :  { %15 = vsyncpa [#allocation3], 0  ;;  %s492_s0 = inlined_call_operand.hbm [shape: f32[16,16], index: 0, kind: input, shape index: {}]   ;;  %s493_s1 = inlined_call_operand.vmem [shape: f32[1,128], index: 1, kind: input, shape index: {}]   ;;  %s494_s2 = inlined_call_operand.hbm [shape: f32[16,32], index: 2, kind: input, shape index: {}]   ;;  %s495_s3 = inlined_call_operand.vmem [shape: f32[1,32], index: 3, kind: input, shape index: {}]   ;;  %s496_s4 = inlined_call_operand.vmem [shape: f32[32,32], index: 4, kind: input, shape index: {}]   ;;  %s497_s5 = inlined_call_operand.vmem [shape: f32[1,32], index: 5, kind: input, shape index: {}]   ;;  %s498_s6 = inlined_call_operand.vmem [shape: f32[32,4], index: 6, kind: input, shape index: {}]   ;;  %s499_s7 = inlined_call_operand.vmem [shape: f32[1,4], index: 7, kind: input, shape index: {}]   ;;  %s500_s8 = inlined_call_operand.vmem [shape: f32[16,4], index: 8, kind: output, shape index: {0}]   ;;  %s501_s9 = inlined_call_operand.hbm [shape: f32[2,128], index: 9, kind: output, shape index: {1}]  }
   0x1   :  { %16 = vsyncpa [#allocation6], 0 }
   0x2   :  { %17 = vsyncpa [#allocation4], 0  ;;  %s22_s11 = sshll.u32 %s492_s0, 4  ;;  %s371_s12 = smov [#allocation2]   ;;  %s23_s11 = int_to_ptr.hbm [resolvable:$true] %s22_s11 }
   0x3   :  { %s24_s13 = sshll.u32 %s371_s12, 4  ;;  %s37_s16 = sshll.u32 %s494_s2, 4  ;;  %s25_s13 = int_to_ptr.vmem [resolvable:$true] %s24_s13  ;;  %s38_s16 = int_to_ptr.hbm [resolvable:$true] %s37_s16 }
   0x4   :  { %s372_s17 = smov 128   ;;  %s373_s18 = smov 8  }
   0x5   :  { %30 = dma.hbm_to_vmem [thread:$0]  %s23_s11, 256, %s25_s13, [#allocation3], %s372_s17, %s372_s17, %s373_s18  }
   0x6   :  { %s374_s19 = smov [#allocation5]  }
   0x7   :  { %s39_s20 = sshll.u32 %s374_s19, 4  ;;  %s40_s20 = int_to_ptr.vmem [resolvable:$true] %s39_s20 }
   0x8   :  { %45 = dma.hbm_to_vmem [thread:$0]  %s38_s16, 256, %s40_s20, [#allocation6], %s372_s17, %s372_s17, %s373_s18  }
   0x9   :  { %365 = dma.done.wait [#allocation3], 256  }
   0xa   :  { %366 = vsyncadd [#allocation3], 4294967040 }
   0xb   :  { %367 = dma.done.wait [#allocation6], 256  }
   0xc   :  { %368 = vsyncadd [#allocation6], 4294967040  ;;  %v67_v0 = vld [vmem:[#allocation5 + $0x8] sm:$0xff]  ;;  %v66_v1 = vld [vmem:[#allocation5] sm:$0xff]  ;;  %vm72_vm0 = vcmask 130048   ;;  %vm112_vm1 = vcmask 261120  }
   0xd   :  { %93 = vmatpush.msra.mxu0 %v67_v0  ;;  %v64_v2 = vld [vmem:[#allocation2] sm:$0xff]  ;;  %v107_v3 = vld [vmem:[%s496_s4 + $0x18] sm:$0xff]  ;;  %v65_v4 = vld [vmem:[#allocation2 + $0x8] sm:$0xff]  ;;  %s375_s14 = smov 16   ;;  %s376_s15 = smov 48   ;;  %vm229_vm2 = vcmask 392192  }
   0xe   :  { %131 = vmatpush.msra.mxu1 %v107_v3  ;;  %273 = vmatpush.msra.mxu3 %v107_v3  ;;  %v106_v5 = vld [vmem:[%s496_s4 + $0x10] sm:$0xff]  ;;  %v105_v6 = vld [vmem:[%s496_s4 + $0x8] sm:$0xff]  ;;  %v104_v7 = vld [vmem:[%s496_s4] sm:$0xff]  ;;  %s377_s16 = smov 32   ;;  %s378_s17 = smov 64   ;;  %vm231_vm3 = vcmask 523264  }
   0xf   :  { %94 = vmatpush.msra.mxu0 %v66_v1  ;;  %v147_v8 = vld [vmem:[%s498_s6 + $0x18] sm:$0xff]  ;;  %v289_v9 = vld [vmem:[%s495_s3] ss:$0 sm:$0xff]  ;;  %v146_v16 = vld [vmem:[%s498_s6 + $0x10] sm:$0xff]  ;;  %s379_s18 = smov 80   ;;  %s380_s19 = smov 112  }
  0x10   :  { %267 = vmatmul.msk.f32.vlgmr.msra.gmra.mxu0 %vm72_vm0, %v64_v2  ;;  %132 = vmatpush.msra.mxu1 %v106_v5  ;;  %v145_v17 = vld [vmem:[%s498_s6 + $0x8] sm:$0xff]  ;;  %v144_v18 = vld [vmem:[%s498_s6] sm:$0xff]  ;;  %s381_s0 = smov 96   ;;  %vm233_vm4 = vcmask 654336   ;;  %vm235_vm5 = vcmask 785408   ;;  %s254_s23 = sshll.u32 %s501_s9, 4  ;;  %s255_s23 = int_to_ptr.hbm [resolvable:$true] %s254_s23 }
  0x11   :  { %274 = vmatpush.msra.mxu3 %v106_v5  ;;  %170 = vmatpush.msra.mxu2 %v147_v8  ;;  %v186_v19 = vld [vmem:[#allocation2 + $0x1] ss:$8 sm:$0x3]  ;;  %v190_v20 = vld [vmem:[#allocation2 + $0x3] ss:$8 sm:$0x3] }
  0x12   :  { %133 = vmatpush.msra.mxu1 %v105_v6  ;;  %200 = vrot.lane.b32.xlu0 %v186_v19, %s375_s14  ;;  %v188_v21 = vld [vmem:[#allocation2 + $0x2] ss:$8 sm:$0x3]  ;;  %v192_v22 = vld [vmem:[#allocation2 + $0x4] ss:$8 sm:$0x3] }
  0x13   :  { %275 = vmatpush.msra.mxu3 %v105_v6  ;;  %171 = vmatpush.msra.mxu2 %v146_v16  ;;  %v194_v23 = vld [vmem:[#allocation2 + $0x5] ss:$8 sm:$0x3]  ;;  %v198_v24 = vld [vmem:[#allocation2 + $0x7] ss:$8 sm:$0x3] }
  0x14   :  { %134 = vmatpush.msra.mxu1 %v104_v7  ;;  %208 = vrot.lane.b32.xlu1 %v190_v20, %s376_s15  ;;  %v196_v25 = vld [vmem:[#allocation2 + $0x6] ss:$8 sm:$0x3]  ;;  %v290_v26 = vld [vmem:[%s497_s5] ss:$0 sm:$0xff]  ;;  %s382_s5 = smov [#allocation7]  }
  0x15   :  { %276 = vmatpush.msra.mxu3 %v104_v7  ;;  %172 = vmatpush.msra.mxu2 %v145_v17  ;;  %v184_v35 = vld [vmem:[#allocation2] ss:$8 sm:$0x3]  ;;  %s252_s21 = sshll.u32 %s382_s5, 4  ;;  %vm237_vm6 = vcmask 916480   ;;  %vm181_vm7 = vcmask 31744   ;;  %s253_s21 = int_to_ptr.vmem [resolvable:$true] %s252_s21 }
  0x16   :  { %216 = vrot.lane.b32.xlu2 %v194_v23, %s379_s18  ;;  %v292_v46 = vld [vmem:[%s493_s1] ss:$0 sm:$0xff] }
  0x17   :  { %173 = vmatpush.msra.mxu2 %v144_v18  ;;  %v291_v50 = vld [vmem:[%s499_s7] ss:$0 sm:$0xff] }
  0x18   :  { %268 = vmatmul.msk.f32.gmra.mxu0 %vm72_vm0, %v65_v4 }
  0x1a   :  { %204 = vrot.lane.b32.xlu0 %v188_v21, %s377_s16 }
  0x1c   :  { %212 = vrot.lane.b32.xlu1 %v192_v22, %s378_s17 }
  0x1e   :  { %220 = vrot.lane.b32.xlu2 %v196_v25, %s381_s0 }
  0x22   :  { %224 = vrot.lane.b32.xlu0 %v198_v24, %s380_s19 }
  0x70   :  { %v217_v36 = vpop.permute.xlu2 %216 }
  0x78   :  { %v221_v43 = vpop.permute.xlu2 %220 }
  0x84   :  { %v201_v33 = vpop.permute.xlu0 %200 }
  0x85   :  { %v227_v37 = vsel %vm72_vm0, %v184_v35, %v201_v33 }
  0x86   :  { %v209_v34 = vpop.permute.xlu1 %208 }
  0x8c   :  { %v205_v38 = vpop.permute.xlu0 %204 }
  0x8d   :  { %v96_v10 = vpop.f32.mrf.mxu0  ;;  %v228_v39 = vsel %vm112_vm1, %v227_v37, %v205_v38 }
  0x8e   :  { %v97_v11 = vadd.f32 %v289_v9, %v96_v10  ;;  %v230_v40 = vsel %vm229_vm2, %v228_v39, %v209_v34  ;;  %v213_v41 = vpop.permute.xlu1 %212 }
  0x8f   :  { %v232_v42 = vsel %vm231_vm3, %v230_v40, %v213_v41 }
  0x90   :  { %v102_v12 = vmax.f32 %v97_v11, 0.0  ;;  %v234_v44 = vsel %vm233_vm4, %v232_v42, %v217_v36 }
  0x91   :  { %v236_v45 = vsel %vm235_vm5, %v234_v44, %v221_v43 }
  0x92   :  { %269 = vmatmul.msk.f32.vlgmr.msra.gmra.mxu1 %vm112_vm1, %v102_v12 }
  0x94   :  { %v225_v47 = vpop.permute.xlu0 %224 }
  0x95   :  { %v99_v13 = vpop.f32.mrf.mxu0  ;;  %v238_v48 = vsel %vm237_vm6, %v236_v45, %v225_v47 }
  0x96   :  { %v100_v14 = vadd.f32 %v289_v9, %v99_v13  ;;  %v243_v49 = vmul.f32 %v292_v46, %v238_v48 }
  0x98   :  { %v103_v15 = vmax.f32 %v100_v14, 0.0  ;;  %244 = vst [vmem:[#allocation7] sm:$0x3] %v243_v49 }
  0x99   :  { %257 = dma.vmem_to_hbm [thread:$0]  %s253_s21, 32, %s255_s23, [#allocation4]  }
  0x9a   :  { %270 = vmatmul.msk.f32.vlgmr.msra.gmra.mxu3 %vm112_vm1, %v103_v15 }
 0x10f   :  { %v136_v27 = vpop.f32.mrf.mxu1 }
 0x110   :  { %v137_v28 = vadd.f32 %v290_v26, %v136_v27 }
 0x112   :  { %v142_v29 = vmax.f32 %v137_v28, 0.0 }
 0x114   :  { %271 = vmatmul.msk.f32.vlgmr.msra.gmra.mxu2 %vm112_vm1, %v142_v29 }
 0x11d   :  { %v139_v30 = vpop.f32.mrf.mxu3 }
 0x11e   :  { %v140_v31 = vadd.f32 %v290_v26, %v139_v30 }
 0x120   :  { %v143_v32 = vmax.f32 %v140_v31, 0.0 }
 0x122   :  { %272 = vmatmul.msk.f32.gmra.mxu2 %vm112_vm1, %v143_v32 }
 0x197   :  { %v175_v51 = vpop.f32.mrf.mxu2 }
 0x198   :  { %v176_v52 = vadd.f32 %v291_v50, %v175_v51 }
 0x19a   :  { %182 = vst.msk [vmem:[%s500_s8] sm:$0xff] %vm181_vm7, %v176_v52 }
 0x1a5   :  { %v178_v53 = vpop.f32.mrf.mxu2 }
 0x1a6   :  { %v179_v54 = vadd.f32 %v291_v50, %v178_v53 }
 0x1a8   :  { %183 = vst.msk [vmem:[%s500_s8 + $0x8] sm:$0xff] %vm181_vm7, %v179_v54 }
 0x1a9   :  { %369 = dma.done.wait [#allocation4], 32  }
 0x1aa   :  { %370 = vsyncadd [#allocation4], 4294967264 }
 0x1ab   :  { %264 = vsyncpa [#allocation3], 1 }
 0x1ac   :  { %265 = vsyncpa [#allocation6], 1 }
 0x1ad   :  { %266 = vsyncpa [#allocation4], 1 }

</bundles_post_ra>
